<compile_context>
chip_gen: v5e
topology: v5e:2x2
jax: 0.10.0
libtpu: 0.0.40
codegen_flags: <defaults>
</compile_context>

<pallas_src>
import jax
import jax.numpy as jnp
from jax.experimental import pallas as pl
from jax.experimental.pallas import tpu as pltpu

_LANE = 128
_SUBLANE = 8


def _round_up(x, m):
    return (x + m - 1) // m * m


def _pack_geometry(d_in, hidden):
    """Per-sample sublane slot size and how many samples share a lane column."""
    slot_needed = _round_up(max(d_in, hidden, 1), _SUBLANE)
    pack = max(1, _LANE // slot_needed)
    # widen the slot so pack*slot lands on (or near) 128 sublanes
    slot = max(slot_needed, (_LANE // pack) // _SUBLANE * _SUBLANE)
    feat = pack * slot
    return pack, slot, feat


def nnforce_forward(params, angles, dihedrals, distances, *, block_cols=2048):
    """Pallas implementation of NNForceNet.forward. Returns shape (B,)."""
    B = angles.shape[0]
    hidden = params["w2"].shape[0]
    d_in = params["w1"].shape[0]

    pack, slot, feat = _pack_geometry(d_in, hidden)

    # ---- feature construction (hoisted out of the kernel) -------------------
    x = jnp.concatenate(
        [jnp.cos(angles), jnp.cos(dihedrals), jnp.sin(dihedrals), distances],
        axis=-1).astype(jnp.float32)

    # ---- batch packing: `pack` samples per 128-lane column ------------------
    bh = -(-B // pack)                 # columns of real data (samples per slot)
    bp = bh * pack                     # padded sample count

    # column tile: multiple of 128 lanes; keep >=2 grid steps when possible
    want = _round_up(max(-(-bh // 2), 1), _LANE)
    cap = max(_round_up(int(block_cols), _LANE), _LANE)
    tbc = max(min(want, cap), _LANE)
    bc_pad = _round_up(bh, tbc)
    grid = (bc_pad // tbc,)

    xp = jnp.pad(x, ((0, bp - B), (0, 0)))            # (bp, d_in)
    xp = xp.reshape(pack, bh, d_in)                   # slot p holds samples p*bh+j
    xt = jnp.transpose(xp, (0, 2, 1))                 # (pack, d_in, bh)
    xt = jnp.pad(xt, ((0, 0), (0, slot - d_in), (0, bc_pad - bh)))
    x_packed = xt.reshape(feat, bc_pad)               # (feat, bc_pad)

    # ---- block-diagonal (transposed) weights, per-slot replicated biases ----
    eye = jnp.eye(pack, dtype=jnp.float32)

    def bdiag(w_t, rows, cols):
        blk = jnp.pad(w_t.astype(jnp.float32),
                      ((0, slot - rows), (0, slot - cols)))
        return jnp.kron(eye, blk)                     # (feat, feat)

    def col(v, rows):
        c = jnp.pad(v.astype(jnp.float32).reshape(-1, 1),
                    ((0, slot - rows), (0, 0)))
        return jnp.tile(c, (pack, 1))                 # (feat, 1)

    w1t = bdiag(params["w1"].T, hidden, d_in)
    w2t = bdiag(params["w2"].T, hidden, hidden)
    w3t = bdiag(params["w3"].T, hidden, hidden)
    w4c = col(params["w4"], hidden)
    b1c = col(params["b1"], hidden)
    b2c = col(params["b2"], hidden)
    b3c = col(params["b3"], hidden)

    # ---- kernel --------------------------------------------------------------
    def kernel(x_ref, w1_ref, b1_ref, w2_ref, b2_ref, w3_ref, b3_ref, w4_ref,
               out_ref):
        # x_ref: (feat, tbc); w*: (feat, feat); b*/w4: (feat, 1); out: (pack, tbc)
        h = jnp.tanh(
            jnp.dot(w1_ref[...], x_ref[...],
                    preferred_element_type=jnp.float32) + b1_ref[...])
        h = jnp.tanh(
            jnp.dot(w2_ref[...], h,
                    preferred_element_type=jnp.float32) + b2_ref[...])
        h = jnp.tanh(
            jnp.dot(w3_ref[...], h,
                    preferred_element_type=jnp.float32) + b3_ref[...])
        # fc4 off the MXU: VPU multiply + per-slot sublane reduction (XLU).
        y = h * w4_ref[...]
        for p in range(pack):                         # static unroll, pack is tiny
            out_ref[p:p + 1, :] = jnp.sum(
                y[p * slot:(p + 1) * slot, :], axis=0, keepdims=True)

    act_spec = pl.BlockSpec((feat, tbc), lambda i: (0, i))
    out_spec = pl.BlockSpec((pack, tbc), lambda i: (0, i))

    def const_spec(shape):
        # Same block index every grid step -> fetched once, stays VMEM-resident.
        return pl.BlockSpec(shape, lambda i: (0, 0))

    out = pl.pallas_call(
        kernel,
        out_shape=jax.ShapeDtypeStruct((pack, bc_pad), jnp.float32),
        grid=grid,
        in_specs=[
            act_spec,
            const_spec((feat, feat)), const_spec((feat, 1)),
            const_spec((feat, feat)), const_spec((feat, 1)),
            const_spec((feat, feat)), const_spec((feat, 1)),
            const_spec((feat, 1)),
        ],
        out_specs=out_spec,
        compiler_params=pltpu.CompilerParams(
            dimension_semantics=("parallel",),
            vmem_limit_bytes=32 * 1024 * 1024),
    )(x_packed, w1t, b1c, w2t, b2c, w3t, b3c, w4c)

    # un-pack: slot p, column j  ->  sample p*bh + j   (== torch.squeeze output)
    # Note: torch.squeeze would give a 0-d tensor for B==1; we always return (B,).
    return out[:, :bh].reshape(-1)[:B]


def init_params(key, n_angles, n_dihedrals, n_distances, hidden_size):
    """Deterministic init mimicking nn.Linear default (U[-1/sqrt(fan_in), +])."""
    d_in = n_angles + 2 * n_dihedrals + n_distances
    ks = jax.random.split(key, 8)

    def lin(kw, kb, fan_in, fan_out, bias=True):
        bound = 1.0 / jnp.sqrt(jnp.asarray(fan_in, jnp.float32))
        w = jax.random.uniform(kw, (fan_in, fan_out), jnp.float32, -bound, bound)
        b = (jax.random.uniform(kb, (fan_out,), jnp.float32, -bound, bound)
             if bias else None)
        return w, b

    w1, b1 = lin(ks[0], ks[1], d_in, hidden_size)
    w2, b2 = lin(ks[2], ks[3], hidden_size, hidden_size)
    w3, b3 = lin(ks[4], ks[5], hidden_size, hidden_size)
    w4, _ = lin(ks[6], ks[7], hidden_size, 1, bias=False)
    return {"w1": w1, "b1": b1, "w2": w2, "b2": b2,
            "w3": w3, "b3": b3, "w4": w4}


def reference_forward(params, angles, dihedrals, distances):
    hp = jax.lax.Precision.HIGHEST
    x = jnp.concatenate(
        [jnp.cos(angles), jnp.cos(dihedrals), jnp.sin(dihedrals), distances],
        axis=-1)
    h = jnp.tanh(jnp.dot(x, params["w1"], precision=hp) + params["b1"])
    h = jnp.tanh(jnp.dot(h, params["w2"], precision=hp) + params["b2"])
    h = jnp.tanh(jnp.dot(h, params["w3"], precision=hp) + params["b3"])
    return jnp.squeeze(jnp.dot(h, params["w4"], precision=hp), axis=-1)


if __name__ == "__main__":
    key = jax.random.PRNGKey(0)
    n_angles, n_dihedrals, n_distances, hidden = 10, 12, 20, 32
    kp, k1, k2, k3 = jax.random.split(key, 4)

    params = init_params(kp, n_angles, n_dihedrals, n_distances, hidden)
    fwd = jax.jit(nnforce_forward, static_argnames=("block_cols",))

    # Small sanity check (B=8, single grid step, 2 samples packed per column).
    B = 8
    angles = jax.random.uniform(k1, (B, n_angles), jnp.float32, 0.0, 3.14)
    dihedrals = jax.random.uniform(k2, (B, n_dihedrals), jnp.float32, -3.14, 3.14)
    distances = jax.random.uniform(k3, (B, n_distances), jnp.float32, 0.1, 2.0)

    out = jax.block_until_ready(fwd(params, angles, dihedrals, distances))
    ref = reference_forward(params, angles, dihedrals, distances)
    assert out.shape == (B,)
    assert jnp.allclose(out, ref, atol=2e-5, rtol=2e-5), (out, ref)

    # Odd batch: exercises pack padding, column padding and a 2-step grid
    # (so v7x can shard the batch axis across both TensorCores).
    B2 = 301
    k4, k5, k6 = jax.random.split(k1, 3)
    angles2 = jax.random.uniform(k4, (B2, n_angles), jnp.float32, 0.0, 3.14)
    dihedrals2 = jax.random.uniform(k5, (B2, n_dihedrals), jnp.float32, -3.14, 3.14)
    distances2 = jax.random.uniform(k6, (B2, n_distances), jnp.float32, 0.1, 2.0)

    out2 = jax.block_until_ready(fwd(params, angles2, dihedrals2, distances2))
    ref2 = reference_forward(params, angles2, dihedrals2, distances2)
    assert out2.shape == (B2,)
    assert jnp.allclose(out2, ref2, atol=2e-5, rtol=2e-5), (
        float(jnp.max(jnp.abs(out2 - ref2))))

    print("KERNEL_OK")
</pallas_src>

<mosaic_0001>
module attributes {stable_mosaic.version = 11 : i64} {
  func.func @kernel(%arg0: i32, %arg1: memref<128x128xf32, #tpu.memory_space<vmem>>, %arg2: memref<128x128xf32, #tpu.memory_space<vmem>>, %arg3: memref<128x1xf32, #tpu.memory_space<vmem>>, %arg4: memref<128x128xf32, #tpu.memory_space<vmem>>, %arg5: memref<128x1xf32, #tpu.memory_space<vmem>>, %arg6: memref<128x128xf32, #tpu.memory_space<vmem>>, %arg7: memref<128x1xf32, #tpu.memory_space<vmem>>, %arg8: memref<128x1xf32, #tpu.memory_space<vmem>>, %arg9: memref<2x128xf32, #tpu.memory_space<vmem>>) attributes {dimension_semantics = [#tpu.dimension_semantics<parallel>], iteration_bounds = array<i64: 1>, scalar_prefetch = 0 : i64, scratch_operands = 0 : i64, tpu.core_type = #tpu.core_type<tc>, window_params = [{transform_indices = @transform_0, window_bounds = array<i64: 128, 128>}, {pipeline_mode = #tpu.pipeline_mode<synchronous>, transform_indices = @transform_1, window_bounds = array<i64: 128, 128>}, {pipeline_mode = #tpu.pipeline_mode<synchronous>, transform_indices = @transform_2, window_bounds = array<i64: 128, 1>}, {pipeline_mode = #tpu.pipeline_mode<synchronous>, transform_indices = @transform_3, window_bounds = array<i64: 128, 128>}, {pipeline_mode = #tpu.pipeline_mode<synchronous>, transform_indices = @transform_4, window_bounds = array<i64: 128, 1>}, {pipeline_mode = #tpu.pipeline_mode<synchronous>, transform_indices = @transform_5, window_bounds = array<i64: 128, 128>}, {pipeline_mode = #tpu.pipeline_mode<synchronous>, transform_indices = @transform_6, window_bounds = array<i64: 128, 1>}, {pipeline_mode = #tpu.pipeline_mode<synchronous>, transform_indices = @transform_7, window_bounds = array<i64: 128, 1>}, {transform_indices = @transform_8, window_bounds = array<i64: 2, 128>}]} {
    %c0 = arith.constant 0 : index
    %c0_0 = arith.constant 0 : index
    %0 = vector.load %arg2[%c0, %c0_0] : memref<128x128xf32, #tpu.memory_space<vmem>>, vector<128x128xf32>
    %c0_1 = arith.constant 0 : index
    %c0_2 = arith.constant 0 : index
    %1 = vector.load %arg1[%c0_1, %c0_2] : memref<128x128xf32, #tpu.memory_space<vmem>>, vector<128x128xf32>
    %cst = arith.constant dense<0.000000e+00> : vector<128x128xf32>
    %2 = tpu.matmul %0, %1, %cst {dimension_numbers = #tpu.dot_dimension_numbers<[1], [0], [0], [1], [0, 0, 1, 1], [], []>} : vector<128x128xf32>, vector<128x128xf32>, vector<128x128xf32> -> vector<128x128xf32>
    %c0_3 = arith.constant 0 : index
    %c0_4 = arith.constant 0 : index
    %3 = vector.load %arg3[%c0_3, %c0_4] : memref<128x1xf32, #tpu.memory_space<vmem>>, vector<128x1xf32>
    %4 = vector.broadcast %3 : vector<128x1xf32> to vector<128x128xf32>
    %5 = arith.addf %2, %4 : vector<128x128xf32>
    %6 = math.tanh %5 : vector<128x128xf32>
    %c0_5 = arith.constant 0 : index
    %c0_6 = arith.constant 0 : index
    %7 = vector.load %arg4[%c0_5, %c0_6] : memref<128x128xf32, #tpu.memory_space<vmem>>, vector<128x128xf32>
    %cst_7 = arith.constant dense<0.000000e+00> : vector<128x128xf32>
    %8 = tpu.matmul %7, %6, %cst_7 {dimension_numbers = #tpu.dot_dimension_numbers<[1], [0], [0], [1], [0, 0, 1, 1], [], []>} : vector<128x128xf32>, vector<128x128xf32>, vector<128x128xf32> -> vector<128x128xf32>
    %c0_8 = arith.constant 0 : index
    %c0_9 = arith.constant 0 : index
    %9 = vector.load %arg5[%c0_8, %c0_9] : memref<128x1xf32, #tpu.memory_space<vmem>>, vector<128x1xf32>
    %10 = vector.broadcast %9 : vector<128x1xf32> to vector<128x128xf32>
    %11 = arith.addf %8, %10 : vector<128x128xf32>
    %12 = math.tanh %11 : vector<128x128xf32>
    %c0_10 = arith.constant 0 : index
    %c0_11 = arith.constant 0 : index
    %13 = vector.load %arg6[%c0_10, %c0_11] : memref<128x128xf32, #tpu.memory_space<vmem>>, vector<128x128xf32>
    %cst_12 = arith.constant dense<0.000000e+00> : vector<128x128xf32>
    %14 = tpu.matmul %13, %12, %cst_12 {dimension_numbers = #tpu.dot_dimension_numbers<[1], [0], [0], [1], [0, 0, 1, 1], [], []>} : vector<128x128xf32>, vector<128x128xf32>, vector<128x128xf32> -> vector<128x128xf32>
    %c0_13 = arith.constant 0 : index
    %c0_14 = arith.constant 0 : index
    %15 = vector.load %arg7[%c0_13, %c0_14] : memref<128x1xf32, #tpu.memory_space<vmem>>, vector<128x1xf32>
    %16 = vector.broadcast %15 : vector<128x1xf32> to vector<128x128xf32>
    %17 = arith.addf %14, %16 : vector<128x128xf32>
    %18 = math.tanh %17 : vector<128x128xf32>
    %c0_15 = arith.constant 0 : index
    %c0_16 = arith.constant 0 : index
    %19 = vector.load %arg8[%c0_15, %c0_16] : memref<128x1xf32, #tpu.memory_space<vmem>>, vector<128x1xf32>
    %20 = vector.broadcast %19 : vector<128x1xf32> to vector<128x128xf32>
    %21 = arith.mulf %18, %20 : vector<128x128xf32>
    %22 = vector.extract_strided_slice %21 {offsets = [0, 0], sizes = [64, 128], strides = [1, 1]} : vector<128x128xf32> to vector<64x128xf32>
    %cst_17 = arith.constant dense<0.000000e+00> : vector<128xf32>
    %23 = vector.multi_reduction <add>, %22, %cst_17 [0] : vector<64x128xf32> to vector<128xf32>
    %24 = vector.shape_cast %23 : vector<128xf32> to vector<1x128xf32>
    %c0_18 = arith.constant 0 : index
    %c0_19 = arith.constant 0 : index
    %25 = vector.load %arg9[%c0_18, %c0_19] : memref<2x128xf32, #tpu.memory_space<vmem>>, vector<1x128xf32>
    tpu.vector_store %arg9[%c0_18, %c0_19], %24 {strides = array<i32>} : memref<2x128xf32, #tpu.memory_space<vmem>>, vector<1x128xf32>,
    %26 = vector.extract_strided_slice %21 {offsets = [64, 0], sizes = [64, 128], strides = [1, 1]} : vector<128x128xf32> to vector<64x128xf32>
    %cst_20 = arith.constant dense<0.000000e+00> : vector<128xf32>
    %27 = vector.multi_reduction <add>, %26, %cst_20 [0] : vector<64x128xf32> to vector<128xf32>
    %28 = vector.shape_cast %27 : vector<128xf32> to vector<1x128xf32>
    %c1 = arith.constant 1 : index
    %c0_21 = arith.constant 0 : index
    %29 = vector.load %arg9[%c1, %c0_21] : memref<2x128xf32, #tpu.memory_space<vmem>>, vector<1x128xf32>
    tpu.vector_store %arg9[%c1, %c0_21], %28 {strides = array<i32>} : memref<2x128xf32, #tpu.memory_space<vmem>>, vector<1x128xf32>,
    return
  }
  func.func @transform_0(%arg0: i32) -> (i32, i32) {
    %c0_i32 = arith.constant 0 : i32
    %c0_i32_0 = arith.constant 0 : i32
    return %c0_i32, %arg0 : i32, i32
  }
  func.func @transform_1(%arg0: i32) -> (i32, i32) {
    %c0_i32 = arith.constant 0 : i32
    %c0_i32_0 = arith.constant 0 : i32
    %c0_i32_1 = arith.constant 0 : i32
    return %c0_i32, %c0_i32_0 : i32, i32
  }
  func.func @transform_2(%arg0: i32) -> (i32, i32) {
    %c0_i32 = arith.constant 0 : i32
    %c0_i32_0 = arith.constant 0 : i32
    %c0_i32_1 = arith.constant 0 : i32
    return %c0_i32, %c0_i32_0 : i32, i32
  }
  func.func @transform_3(%arg0: i32) -> (i32, i32) {
    %c0_i32 = arith.constant 0 : i32
    %c0_i32_0 = arith.constant 0 : i32
    %c0_i32_1 = arith.constant 0 : i32
    return %c0_i32, %c0_i32_0 : i32, i32
  }
  func.func @transform_4(%arg0: i32) -> (i32, i32) {
    %c0_i32 = arith.constant 0 : i32
    %c0_i32_0 = arith.constant 0 : i32
    %c0_i32_1 = arith.constant 0 : i32
    return %c0_i32, %c0_i32_0 : i32, i32
  }
  func.func @transform_5(%arg0: i32) -> (i32, i32) {
    %c0_i32 = arith.constant 0 : i32
    %c0_i32_0 = arith.constant 0 : i32
    %c0_i32_1 = arith.constant 0 : i32
    return %c0_i32, %c0_i32_0 : i32, i32
  }
  func.func @transform_6(%arg0: i32) -> (i32, i32) {
    %c0_i32 = arith.constant 0 : i32
    %c0_i32_0 = arith.constant 0 : i32
    %c0_i32_1 = arith.constant 0 : i32
    return %c0_i32, %c0_i32_0 : i32, i32
  }
  func.func @transform_7(%arg0: i32) -> (i32, i32) {
    %c0_i32 = arith.constant 0 : i32
    %c0_i32_0 = arith.constant 0 : i32
    %c0_i32_1 = arith.constant 0 : i32
    return %c0_i32, %c0_i32_0 : i32, i32
  }
  func.func @transform_8(%arg0: i32) -> (i32, i32) {
    %c0_i32 = arith.constant 0 : i32
    %c0_i32_0 = arith.constant 0 : i32
    return %c0_i32, %arg0 : i32, i32
  }
}

</mosaic_0001>

<bundles_post_ra>
// kernel: cos.2
= control target key start
LH: loop header
LB: loop body
LE: loop exit
PB: predicated region body
PF: predicated region fallthrough
CT: control target
= control target key end

     0   :  { %v168_v12 = vmov 683565275   ;;  %v169_v14 = vmov 2475754826   ;;  %v170_v16 = vmov 2131351028   ;;  %s245_s0 = inlined_call_operand.vmem [shape: f32[8,10], index: 0, kind: input, shape index: {}]   ;;  %s246_s1 = inlined_call_operand.vmem [shape: f32[8,10], index: 1, kind: output, shape index: {}]  }
   0x1   :  { %v188_v0 = vld [vmem:[%s245_s0] sm:$0xff]  ;;  %v171_v18 = vmov 2102212464   ;;  %v172_v20 = vmov 920167782  }
   0x2   :  { %v6_v1 = vand.u32 2139095040, %v188_v0  ;;  %v3_v3 = vand.u32 2147483647, %v188_v0  ;;  %v173_v26 = vmov 1326507024   ;;  %vm5_vm12 = vcmp.lt.s32.totalorder %v188_v0, 0 }
   0x4   :  { %v7_v2 = vshrl.u32 %v6_v1, 23  ;;  %v10_v6 = vand.u32 8388607, %v3_v3  ;;  %v174_v1 = vmov 0   ;;  %vm232_vm13 = vcmp.le.f32.partialorder %v3_v3, 0.7853982 }
   0x6   :  { %v158_v4 = vadd.s32 4294967169, %v7_v2  ;;  %v11_v9 = vor.u32 8388608, %v10_v6 }
   0x8   :  { %v13_v5 = vadd.s32 1, %v158_v4  ;;  %v197_v28 = vshll.u32 %v11_v9, 8 }
   0xa   :  { %vm14_vm0 = vcmp.gt.s32.totalorder %v13_v5, 0  ;;  %v52_v40 = vand.u32 65535, %v197_v28  ;;  %v53_v41 = vshrl.u32 %v197_v28, 16 }
   0xb   :  { %v15_v7 = vsel %vm14_vm0, %v13_v5, 0 }
   0xc   :  { %v17_v8 = vand.u32 31, %v15_v7  ;;  %v194_v10 = vshrl.u32 %v15_v7, 5 }
   0xe   :  { %v18_v11 = vsub.s32 32, %v17_v8  ;;  %v20_v13 = vshll.u32 %v168_v12, %v17_v8  ;;  %v23_v15 = vshll.u32 %v169_v14, %v17_v8  ;;  %v26_v17 = vshll.u32 %v170_v16, %v17_v8 }
   0xf   :  { %v29_v19 = vshll.u32 %v171_v18, %v17_v8  ;;  %v32_v21 = vshll.u32 %v172_v20, %v17_v8  ;;  %vm35_vm1 = vcmp.lt.s32.totalorder %v194_v10, 1  ;;  %vm38_vm2 = vcmp.lt.s32.totalorder %v194_v10, 4 }
  0x10   :  { %v21_v22 = vshrl.u32 %v169_v14, %v18_v11  ;;  %v24_v23 = vshrl.u32 %v170_v16, %v18_v11  ;;  %v27_v24 = vshrl.u32 %v171_v18, %v18_v11  ;;  %v30_v25 = vshrl.u32 %v172_v20, %v18_v11 }
  0x11   :  { %v33_v27 = vshrl.u32 %v173_v26, %v18_v11  ;;  %vm37_vm3 = vcmp.lt.s32.totalorder %v194_v10, 3  ;;  %vm36_vm4 = vcmp.lt.s32.totalorder %v194_v10, 2  ;;  %v19_v48 = vshrl.u32 %v168_v12, %v18_v11 }
  0x12   :  { %v22_v29 = vor.u32 %v21_v22, %v20_v13  ;;  %v25_v30 = vor.u32 %v24_v23, %v23_v15  ;;  %v28_v31 = vor.u32 %v27_v24, %v26_v17  ;;  %v31_v32 = vor.u32 %v30_v25, %v29_v19 }
  0x13   :  { %v34_v33 = vor.u32 %v33_v27, %v32_v21 }
  0x14   :  { %v43_v34 = vsel %vm35_vm1, %v22_v29, %v25_v30  ;;  %v47_v35 = vsel %vm35_vm1, %v25_v30, %v28_v31  ;;  %v44_v36 = vsel %vm38_vm2, %v31_v32, 920167782  ;;  %v39_v61 = vsel %vm35_vm1, %v19_v48, %v22_v29 }
  0x15   :  { %v48_v37 = vsel %vm38_vm2, %v34_v33, 1326507024  ;;  %v45_v38 = vsel %vm37_vm3, %v28_v31, %v44_v36  ;;  %v40_v63 = vsel %vm38_vm2, %v28_v31, 2102212464  ;;  %vm146_vm1 = vweird.f32 %v188_v0 }
  0x16   :  { %v49_v39 = vsel %vm37_vm3, %v31_v32, %v48_v37  ;;  %v46_v42 = vsel %vm36_vm4, %v43_v34, %v45_v38  ;;  %v41_v12 = vsel %vm37_vm3, %v25_v30, %v40_v63 }
  0x17   :  { %v50_v43 = vsel %vm36_vm4, %v47_v35, %v49_v39  ;;  %v76_v46 = vand.u32 65535, %v46_v42  ;;  %v77_v47 = vshrl.u32 %v46_v42, 16  ;;  %v42_v10 = vsel %vm36_vm4, %v39_v61, %v41_v12 }
  0x18   :  { %v54_v44 = vand.u32 65535, %v50_v43  ;;  %v55_v45 = vshrl.u32 %v50_v43, 16  ;;  %v96_v23 = vmul.u32 %v197_v28, %v42_v10 }
  0x19   :  { %v78_v52 = vmul.u32 %v76_v46, %v52_v40  ;;  %v79_v53 = vmul.u32 %v77_v47, %v52_v40  ;;  %v80_v54 = vmul.u32 %v76_v46, %v53_v41  ;;  %v81_v58 = vmul.u32 %v77_v47, %v53_v41 }
  0x1a   :  { %v56_v49 = vmul.u32 %v54_v44, %v52_v40  ;;  %v57_v50 = vmul.u32 %v55_v45, %v52_v40  ;;  %v58_v51 = vmul.u32 %v54_v44, %v53_v41  ;;  %v59_v55 = vmul.u32 %v55_v45, %v53_v41 }
  0x1b   :  { %v82_v59 = vshll.u32 %v79_v53, 16  ;;  %v84_v60 = vshll.u32 %v80_v54, 16  ;;  %v83_v9 = vshrl.u32 %v79_v53, 16  ;;  %v85_v16 = vshrl.u32 %v80_v54, 16 }
  0x1c   :  { %v60_v56 = vshll.u32 %v57_v50, 16  ;;  %v62_v57 = vshll.u32 %v58_v51, 16  ;;  %v61_v5 = vshrl.u32 %v57_v50, 16  ;;  %v63_v13 = vshrl.u32 %v58_v51, 16 }
  0x1d   :  { %vm86_vm6 = vc.u32 %v78_v52, %v82_v59  ;;  %v88_v4 = vadd.s32 %v82_v59, %v78_v52 }
  0x1e   :  { %vm64_vm5 = vc.u32 %v56_v49, %v60_v56  ;;  %v66_v62 = vadd.s32 %v60_v56, %v56_v49  ;;  %v87_v7 = vsel %vm86_vm6, 1, %v174_v1 }
  0x1f   :  { %v65_v2 = vsel %vm64_vm5, 1, %v174_v1  ;;  %v89_v11 = vadd.s32 %v87_v7, %v81_v58  ;;  %vm90_vm8 = vc.u32 %v88_v4, %v84_v60  ;;  %v92_v19 = vadd.s32 %v88_v4, %v84_v60 }
  0x20   :  { %v67_v6 = vadd.s32 %v65_v2, %v59_v55  ;;  %vm68_vm7 = vc.u32 %v66_v62, %v62_v57  ;;  %v91_v15 = vsel %vm90_vm8, 1, %v174_v1 }
  0x21   :  { %v69_v8 = vsel %vm68_vm7, 1, %v174_v1  ;;  %v93_v17 = vadd.s32 %v91_v15, %v89_v11 }
  0x22   :  { %v71_v14 = vadd.s32 %v69_v8, %v67_v6 }
  0x23   :  { %v94_v20 = vadd.s32 %v93_v17, %v83_v9 }
  0x24   :  { %v72_v18 = vadd.s32 %v71_v14, %v61_v5 }
  0x25   :  { %v95_v22 = vadd.s32 %v94_v20, %v85_v16 }
  0x26   :  { %v73_v21 = vadd.s32 %v72_v18, %v63_v13 }
  0x27   :  { %v99_v24 = vadd.s32 1, %v95_v22 }
  0x28   :  { %vm98_vm9 = vc.u32 %v73_v21, %v92_v19  ;;  %v97_v35 = vadd.s32 %v92_v19, %v73_v21 }
  0x29   :  { %v100_v25 = vsel %vm98_vm9, %v99_v24, %v95_v22 }
  0x2a   :  { %v101_v26 = vadd.s32 %v100_v25, %v96_v23 }
  0x2c   :  { %v102_v27 = vadd.s32 536870912, %v101_v26 }
  0x2e   :  { %v103_v28 = vshrl.u32 %v102_v27, 30 }
  0x30   :  { %v104_v29 = vshll.u32 %v103_v28, 30  ;;  %v127_v50 = vsub.s32 4, %v103_v28 }
  0x32   :  { %v105_v30 = vsub.s32 %v101_v26, %v104_v29  ;;  %v128_v55 = vsel %vm5_vm12, %v127_v50, %v103_v28 }
  0x33   :  { %v130_v58 = vsel %vm232_vm13, 0, %v128_v55 }
  0x34   :  { %vm106_vm10 = vcmp.lt.s32.totalorder %v105_v30, 0  ;;  %v107_v31 = vsub.s32 0, %v105_v30  ;;  %v147_v63 = vand.u32 3, %v130_v58 }
  0x36   :  { %v108_v32 = vsel %vm106_vm10, %v107_v31, %v105_v30  ;;  %vm152_vm14 = vcmp.eq.s32.totalorder %v147_v63, 2  ;;  %vm149_vm15 = vcmp.eq.s32.totalorder %v147_v63, 0  ;;  %vm148_vm0 = vcmp.lt.s32.totalorder %v147_v63, 2 }
  0x37   :  { %v109_v33 = vclz %v108_v32 }
  0x39   :  { %v159_v34 = vadd.s32 4294967294, %v109_v33 }
  0x3b   :  { %vm160_vm11 = vcmp.lt.s32.totalorder %v159_v34, 0 }
  0x3c   :  { %v112_v36 = vsel %vm160_vm11, 0, %v159_v34 }
  0x3d   :  { %v113_v37 = vsub.s32 32, %v112_v36  ;;  %v114_v38 = vshll.u32 %v105_v30, %v112_v36  ;;  %v117_v39 = vsub.s32 4294967266, %v112_v36 }
  0x3f   :  { %v115_v40 = vshrl.u32 %v97_v35, %v113_v37  ;;  %v118_v41 = vadd.s32 127, %v117_v39 }
  0x41   :  { %v116_v42 = vor.u32 %v115_v40, %v114_v38  ;;  %v119_v43 = vshll.u32 %v118_v41, 23 }
  0x43   :  { %v120_v44 = vor.u32 4788187, %v119_v43  ;;  %v123_v45 = vcvt.s32.f32 %v116_v42 }
  0x45   :  { %v121_v46 = vand.u32 2147483647, %v120_v44 }
  0x47   :  { %v124_v47 = vmul.f32 %v123_v45, %v121_v46 }
  0x49   :  { %v125_v48 = vxor.u32 2147483648, %v124_v47 }
  0x4b   :  { %v126_v49 = vsel %vm5_vm12, %v125_v48, %v124_v47 }
  0x4c   :  { %v129_v51 = vsel %vm232_vm13, %v188_v0, %v126_v49 }
  0x4d   :  { %v131_v52 = vmul.f32 %v129_v51, %v129_v51 }
  0x4f   :  { %v132_v53 = vmul.f32 -0.001358992, %v131_v52  ;;  %v139_v54 = vmul.f32 -0.00019511016, %v131_v52 }
  0x51   :  { %v133_v56 = vadd.f32 0.041655596, %v132_v53  ;;  %v140_v57 = vadd.f32 0.008332121, %v139_v54 }
  0x53   :  { %v134_v59 = vmul.f32 %v133_v56, %v131_v52  ;;  %v141_v60 = vmul.f32 %v140_v57, %v131_v52 }
  0x55   :  { %v135_v61 = vadd.f32 -0.4999988, %v134_v59  ;;  %v142_v62 = vadd.f32 -0.16666654, %v141_v60 }
  0x57   :  { %v136_v1 = vmul.f32 %v135_v61, %v131_v52  ;;  %v143_v2 = vmul.f32 %v142_v62, %v131_v52 }
  0x59   :  { %v137_v4 = vadd.f32 1.0, %v136_v1  ;;  %v144_v5 = vadd.f32 1.0, %v143_v2 }
  0x5b   :  { %v145_v6 = vmul.f32 %v144_v5, %v129_v51  ;;  %v153_v7 = vxor.u32 2147483648, %v137_v4 }
  0x5d   :  { %v150_v8 = vxor.u32 2147483648, %v145_v6  ;;  %v154_v9 = vsel %vm152_vm14, %v153_v7, %v145_v6 }
  0x5f   :  { %v151_v0 = vsel %vm149_vm15, %v137_v4, %v150_v8 }
  0x60   :  { %v155_v11 = vsel %vm148_vm0, %v151_v0, %v154_v9 }
  0x61   :  { %v156_v12 = vsel %vm146_vm1, nan, %v155_v11 }
  0x62   :  { %157 = vst [vmem:[%s246_s1] sm:$0xff] %v156_v12 }

// kernel: nnforce_forward.1
= control target key start
LH: loop header
LB: loop body
LE: loop exit
PB: predicated region body
PF: predicated region fallthrough
CT: control target
= control target key end

     0   :  { %v916_v0 = vmov 0   ;;  %s1418_s2 = inlined_call_operand.vmem [shape: f32[128,1], index: 2, kind: input, shape index: {}]   ;;  %s1419_s0 = inlined_call_operand.vmem [shape: f32[128,128], index: 0, kind: input, shape index: {}]   ;;  %s1420_s1 = inlined_call_operand.vmem [shape: f32[128,128], index: 1, kind: input, shape index: {}]   ;;  %s1421_s4 = inlined_call_operand.vmem [shape: f32[128,1], index: 4, kind: input, shape index: {}]   ;;  %s1422_s6 = inlined_call_operand.vmem [shape: f32[128,1], index: 6, kind: input, shape index: {}]   ;;  %s1423_s7 = inlined_call_operand.vmem [shape: f32[128,1], index: 7, kind: input, shape index: {}]   ;;  %s1424_s3 = inlined_call_operand.vmem [shape: f32[128,128], index: 3, kind: input, shape index: {}]   ;;  %s1425_s5 = inlined_call_operand.vmem [shape: f32[128,128], index: 5, kind: input, shape index: {}]   ;;  %s1426_s8 = inlined_call_operand.vmem [shape: f32[2,128], index: 8, kind: output, shape index: {}]  }
   0x1   :  { %819 = vset.pattern.permute.xlu2 %v916_v0  ;;  %818 = vset.pattern.permute.xlu1 %v916_v0  ;;  %v76_v1 = vld [vmem:[%s1418_s2 + $0x78] sm:$0xff]  ;;  %v74_v2 = vld [vmem:[%s1418_s2 + $0x68] sm:$0xff]  ;;  %v59_v5 = vld [vmem:[%s1419_s0 + $0x70] sm:$0xff] }
   0x2   :  { %v72_v3 = vld [vmem:[%s1418_s2 + $0x58] sm:$0xff]  ;;  %817 = vset.pattern.permute.xlu0 %v916_v0  ;;  %144 = vperm.xlu1 %818, %v74_v2   ;;  %v58_v6 = vld [vmem:[%s1419_s0 + $0x68] sm:$0xff]  ;;  %v57_v7 = vld [vmem:[%s1419_s0 + $0x60] sm:$0xff] }
   0x3   :  { %v60_v4 = vld [vmem:[%s1419_s0 + $0x78] sm:$0xff]  ;;  %154 = vperm.xlu0 %817, %v76_v1   ;;  %134 = vperm.xlu2 %819, %v72_v3   ;;  %v73_v8 = vld [vmem:[%s1418_s2 + $0x60] sm:$0xff]  ;;  %v75_v9 = vld [vmem:[%s1418_s2 + $0x70] sm:$0xff] }
   0x4   :  { %157 = vmatpush.msra.mxu0 %v60_v4  ;;  %768 = vmatpush.msra.mxu3 %v60_v4  ;;  %v71_v10 = vld [vmem:[%s1418_s2 + $0x50] sm:$0xff]  ;;  %v56_v11 = vld [vmem:[%s1419_s0 + $0x58] sm:$0xff]  ;;  %v54_v13 = vld [vmem:[%s1419_s0 + $0x48] sm:$0xff] }
   0x5   :  { %v55_v12 = vld [vmem:[%s1419_s0 + $0x50] sm:$0xff]  ;;  %v53_v14 = vld [vmem:[%s1419_s0 + $0x40] sm:$0xff]  ;;  %v70_v16 = vld [vmem:[%s1418_s2 + $0x48] sm:$0xff] }
   0x6   :  { %158 = vmatpush.msra.mxu0 %v59_v5  ;;  %769 = vmatpush.msra.mxu3 %v59_v5  ;;  %v69_v15 = vld [vmem:[%s1418_s2 + $0x40] sm:$0xff]  ;;  %v68_v17 = vld [vmem:[%s1418_s2 + $0x38] sm:$0xff]  ;;  %v51_v19 = vld [vmem:[%s1419_s0 + $0x30] sm:$0xff] }
   0x7   :  { %v52_v18 = vld [vmem:[%s1419_s0 + $0x38] sm:$0xff]  ;;  %v50_v20 = vld [vmem:[%s1419_s0 + $0x28] sm:$0xff]  ;;  %v49_v21 = vld [vmem:[%s1419_s0 + $0x20] sm:$0xff] }
   0x8   :  { %159 = vmatpush.msra.mxu0 %v58_v6  ;;  %770 = vmatpush.msra.mxu3 %v58_v6  ;;  %v66_v22 = vld [vmem:[%s1418_s2 + $0x28] sm:$0xff]  ;;  %v67_v23 = vld [vmem:[%s1418_s2 + $0x30] sm:$0xff]  ;;  %v65_v24 = vld [vmem:[%s1418_s2 + $0x20] sm:$0xff] }
   0x9   :  { %v48_v25 = vld [vmem:[%s1419_s0 + $0x18] sm:$0xff]  ;;  %v47_v26 = vld [vmem:[%s1419_s0 + $0x10] sm:$0xff]  ;;  %v46_v27 = vld [vmem:[%s1419_s0 + $0x8] sm:$0xff] }
   0xa   :  { %160 = vmatpush.msra.mxu0 %v57_v7  ;;  %139 = vperm.xlu1 %818, %v73_v8   ;;  %v45_v28 = vld [vmem:[%s1419_s0] sm:$0xff]  ;;  %v63_v29 = vld [vmem:[%s1418_s2 + $0x10] sm:$0xff]  ;;  %v64_v31 = vld [vmem:[%s1418_s2 + $0x18] sm:$0xff] }
   0xb   :  { %149 = vperm.xlu0 %817, %v75_v9   ;;  %129 = vperm.xlu2 %819, %v71_v10   ;;  %v29_v30 = vld [vmem:[%s1420_s1] sm:$0xff]  ;;  %v62_v32 = vld [vmem:[%s1418_s2 + $0x8] sm:$0xff]  ;;  %v269_v33 = vld [vmem:[%s1421_s4 + $0x78] sm:$0xff] }
   0xc   :  { %161 = vmatpush.msra.mxu0 %v56_v11  ;;  %771 = vmatpush.msra.mxu3 %v57_v7  ;;  %v30_v34 = vld [vmem:[%s1420_s1 + $0x8] sm:$0xff]  ;;  %v61_v35 = vld [vmem:[%s1418_s2] sm:$0xff]  ;;  %v268_v36 = vld [vmem:[%s1421_s4 + $0x70] sm:$0xff] }
   0xd   :  { %v41_v37 = vld [vmem:[%s1420_s1 + $0x60] sm:$0xff]  ;;  %v31_v39 = vld [vmem:[%s1420_s1 + $0x10] sm:$0xff]  ;;  %v267_v40 = vld [vmem:[%s1421_s4 + $0x68] sm:$0xff] }
   0xe   :  { %162 = vmatpush.msra.mxu0 %v55_v12  ;;  %772 = vmatpush.msra.mxu3 %v56_v11  ;;  %v266_v38 = vld [vmem:[%s1421_s4 + $0x60] sm:$0xff]  ;;  %v265_v41 = vld [vmem:[%s1421_s4 + $0x58] sm:$0xff]  ;;  %v42_v42 = vld [vmem:[%s1420_s1 + $0x68] sm:$0xff] }
   0xf   :  { %v263_v43 = vld [vmem:[%s1421_s4 + $0x48] sm:$0xff]  ;;  %v32_v44 = vld [vmem:[%s1420_s1 + $0x18] sm:$0xff]  ;;  %v264_v45 = vld [vmem:[%s1421_s4 + $0x50] sm:$0xff] }
  0x10   :  { %163 = vmatpush.msra.mxu0 %v54_v13  ;;  %773 = vmatpush.msra.mxu3 %v55_v12  ;;  %v262_v46 = vld [vmem:[%s1421_s4 + $0x40] sm:$0xff]  ;;  %v43_v47 = vld [vmem:[%s1420_s1 + $0x70] sm:$0xff]  ;;  %v261_v50 = vld [vmem:[%s1421_s4 + $0x38] sm:$0xff] }
  0x11   :  { %v260_v48 = vld [vmem:[%s1421_s4 + $0x30] sm:$0xff]  ;;  %v33_v49 = vld [vmem:[%s1420_s1 + $0x20] sm:$0xff]  ;;  %v259_v51 = vld [vmem:[%s1421_s4 + $0x28] sm:$0xff] }
  0x12   :  { %164 = vmatpush.msra.mxu0 %v53_v14  ;;  %119 = vperm.xlu1 %818, %v69_v15   ;;  %v44_v52 = vld [vmem:[%s1420_s1 + $0x78] sm:$0xff]  ;;  %v34_v54 = vld [vmem:[%s1420_s1 + $0x28] sm:$0xff]  ;;  %v258_v55 = vld [vmem:[%s1421_s4 + $0x20] sm:$0xff] }
  0x13   :  { %124 = vperm.xlu0 %817, %v70_v16   ;;  %114 = vperm.xlu2 %819, %v68_v17   ;;  %v257_v53 = vld [vmem:[%s1421_s4 + $0x18] sm:$0xff]  ;;  %v256_v56 = vld [vmem:[%s1421_s4 + $0x10] sm:$0xff]  ;;  %v254_v57 = vld [vmem:[%s1421_s4] sm:$0xff] }
  0x14   :  { %165 = vmatpush.msra.mxu0 %v52_v18  ;;  %774 = vmatpush.msra.mxu3 %v54_v13  ;;  %v35_v58 = vld [vmem:[%s1420_s1 + $0x30] sm:$0xff]  ;;  %v255_v59 = vld [vmem:[%s1421_s4 + $0x8] sm:$0xff]  ;;  %v447_v60 = vld [vmem:[%s1422_s6] sm:$0xff] }
  0x15   :  { %v449_v61 = vld [vmem:[%s1422_s6 + $0x10] sm:$0xff]  ;;  %v36_v62 = vld [vmem:[%s1420_s1 + $0x38] sm:$0xff]  ;;  %v448_v63 = vld [vmem:[%s1422_s6 + $0x8] sm:$0xff] }
  0x16   :  { %166 = vmatpush.msra.mxu0 %v51_v19  ;;  %775 = vmatpush.msra.mxu3 %v53_v14  ;;  %v450_v0 = vld [vmem:[%s1422_s6 + $0x18] sm:$0xff]  ;;  %v452_v1 = vld [vmem:[%s1422_s6 + $0x28] sm:$0xff]  ;;  %v37_v2 = vld [vmem:[%s1420_s1 + $0x40] sm:$0xff] }
  0x17   :  { %v451_v3 = vld [vmem:[%s1422_s6 + $0x20] sm:$0xff]  ;;  %v453_v4 = vld [vmem:[%s1422_s6 + $0x30] sm:$0xff]  ;;  %v38_v6 = vld [vmem:[%s1420_s1 + $0x48] sm:$0xff] }
  0x18   :  { %167 = vmatpush.msra.mxu0 %v50_v20  ;;  %776 = vmatpush.msra.mxu3 %v52_v18  ;;  %v455_v5 = vld [vmem:[%s1422_s6 + $0x40] sm:$0xff]  ;;  %v454_v7 = vld [vmem:[%s1422_s6 + $0x38] sm:$0xff]  ;;  %v456_v8 = vld [vmem:[%s1422_s6 + $0x48] sm:$0xff] }
  0x19   :  { %v458_v9 = vld [vmem:[%s1422_s6 + $0x58] sm:$0xff]  ;;  %v39_v10 = vld [vmem:[%s1420_s1 + $0x50] sm:$0xff]  ;;  %v459_v12 = vld [vmem:[%s1422_s6 + $0x60] sm:$0xff] }
  0x1a   :  { %168 = vmatpush.msra.mxu0 %v49_v21  ;;  %104 = vperm.xlu1 %818, %v66_v22   ;;  %v457_v11 = vld [vmem:[%s1422_s6 + $0x50] sm:$0xff]  ;;  %v40_v14 = vld [vmem:[%s1420_s1 + $0x58] sm:$0xff]  ;;  %v460_v15 = vld [vmem:[%s1422_s6 + $0x68] sm:$0xff] }
  0x1b   :  { %109 = vperm.xlu0 %817, %v67_v23   ;;  %99 = vperm.xlu2 %819, %v65_v24   ;;  %v461_v13 = vld [vmem:[%s1422_s6 + $0x70] sm:$0xff]  ;;  %v462_v16 = vld [vmem:[%s1422_s6 + $0x78] sm:$0xff]  ;;  %v625_v17 = vld [vmem:[%s1423_s7 + $0x8] sm:$0xff] }
  0x1c   :  { %169 = vmatpush.msra.mxu0 %v48_v25  ;;  %777 = vmatpush.msra.mxu3 %v51_v19  ;;  %v624_v18 = vld [vmem:[%s1423_s7] sm:$0xff]  ;;  %v626_v19 = vld [vmem:[%s1423_s7 + $0x10] sm:$0xff]  ;;  %v633_v24 = vld [vmem:[%s1423_s7 + $0x48] sm:$0xff] }
  0x1d   :  { %v632_v22 = vld [vmem:[%s1423_s7 + $0x40] sm:$0xff]  ;;  %v634_v23 = vld [vmem:[%s1423_s7 + $0x50] sm:$0xff] }
  0x1e   :  { %170 = vmatpush.msra.mxu0 %v47_v26  ;;  %778 = vmatpush.msra.mxu3 %v50_v20  ;;  %v628_v20 = vld [vmem:[%s1423_s7 + $0x20] sm:$0xff] }
  0x20   :  { %171 = vmatpush.msra.mxu0 %v46_v27  ;;  %779 = vmatpush.msra.mxu3 %v49_v21  ;;  %v627_v21 = vld [vmem:[%s1423_s7 + $0x18] sm:$0xff] }
  0x22   :  { %172 = vmatpush.msra.mxu0 %v45_v28  ;;  %89 = vperm.xlu1 %818, %v63_v29   ;;  %v638_v29 = vld [vmem:[%s1423_s7 + $0x70] sm:$0xff] }
  0x23   :  { %173 = vmatmul.f32.vlgmr.msra.gmra.mxu0 %v29_v30  ;;  %94 = vperm.xlu0 %817, %v64_v31   ;;  %v630_v31 = vld [vmem:[%s1423_s7 + $0x30] sm:$0xff] }
  0x24   :  { %84 = vperm.xlu2 %819, %v62_v32   ;;  %780 = vmatpush.msra.mxu3 %v48_v25  ;;  %v635_v25 = vld [vmem:[%s1423_s7 + $0x58] sm:$0xff] }
  0x25   :  { %v631_v32 = vld [vmem:[%s1423_s7 + $0x38] sm:$0xff] }
  0x26   :  { %781 = vmatpush.msra.mxu3 %v47_v26  ;;  %v629_v26 = vld [vmem:[%s1423_s7 + $0x28] sm:$0xff] }
  0x28   :  { %782 = vmatpush.msra.mxu3 %v46_v27  ;;  %v636_v27 = vld [vmem:[%s1423_s7 + $0x60] sm:$0xff] }
  0x2a   :  { %347 = vperm.xlu1 %818, %v269_v33   ;;  %783 = vmatpush.msra.mxu3 %v45_v28  ;;  %v637_v28 = vld [vmem:[%s1423_s7 + $0x68] sm:$0xff] }
  0x2b   :  { %176 = vmatmul.f32.gmra.mxu0 %v30_v34  ;;  %79 = vperm.xlu0 %817, %v61_v35   ;;  %v639_v34 = vld [vmem:[%s1423_s7 + $0x78] sm:$0xff] }
  0x2c   :  { %342 = vperm.xlu2 %819, %v268_v36   ;;  %209 = vmatmul.f32.vlgmr.msra.gmra.mxu3 %v41_v37 }
  0x32   :  { %332 = vperm.xlu1 %818, %v266_v38  }
  0x33   :  { %179 = vmatmul.f32.gmra.mxu0 %v31_v39  ;;  %337 = vperm.xlu0 %817, %v267_v40  }
  0x34   :  { %327 = vperm.xlu2 %819, %v265_v41   ;;  %212 = vmatmul.f32.gmra.mxu3 %v42_v42 }
  0x3a   :  { %317 = vperm.xlu1 %818, %v263_v43  }
  0x3b   :  { %182 = vmatmul.f32.gmra.mxu0 %v32_v44  ;;  %322 = vperm.xlu0 %817, %v264_v45  }
  0x3c   :  { %312 = vperm.xlu2 %819, %v262_v46   ;;  %215 = vmatmul.f32.gmra.mxu3 %v43_v47 }
  0x42   :  { %302 = vperm.xlu1 %818, %v260_v48  }
  0x43   :  { %185 = vmatmul.f32.gmra.mxu0 %v33_v49  ;;  %307 = vperm.xlu0 %817, %v261_v50  }
  0x44   :  { %297 = vperm.xlu2 %819, %v259_v51   ;;  %218 = vmatmul.f32.gmra.mxu3 %v44_v52 }
  0x4a   :  { %287 = vperm.xlu1 %818, %v257_v53  }
  0x4b   :  { %188 = vmatmul.f32.gmra.mxu0 %v34_v54  ;;  %292 = vperm.xlu0 %817, %v258_v55  }
  0x4c   :  { %282 = vperm.xlu2 %819, %v256_v56  }
  0x52   :  { %272 = vperm.xlu1 %818, %v254_v57  }
  0x53   :  { %191 = vmatmul.f32.gmra.mxu0 %v35_v58  ;;  %277 = vperm.xlu0 %817, %v255_v59  }
  0x54   :  { %465 = vperm.xlu2 %819, %v447_v60  }
  0x5a   :  { %475 = vperm.xlu1 %818, %v449_v61  }
  0x5b   :  { %194 = vmatmul.f32.gmra.mxu0 %v36_v62  ;;  %470 = vperm.xlu0 %817, %v448_v63  }
  0x5c   :  { %480 = vperm.xlu2 %819, %v450_v0  }
  0x5d   :  { %v135_v58 = vpop.permute.xlu2 %134 }
  0x62   :  { %490 = vperm.xlu1 %818, %v452_v1  }
  0x63   :  { %197 = vmatmul.f32.gmra.mxu0 %v37_v2  ;;  %485 = vperm.xlu0 %817, %v451_v3  }
  0x64   :  { %495 = vperm.xlu2 %819, %v453_v4  }
  0x65   :  { %v130_v60 = vpop.permute.xlu2 %129 }
  0x6a   :  { %505 = vperm.xlu1 %818, %v455_v5  }
  0x6b   :  { %200 = vmatmul.f32.gmra.mxu0 %v38_v6  ;;  %500 = vperm.xlu0 %817, %v454_v7  }
  0x6c   :  { %510 = vperm.xlu2 %819, %v456_v8  }
  0x6d   :  { %v115_v0 = vpop.permute.xlu2 %114 }
  0x72   :  { %520 = vperm.xlu1 %818, %v458_v9  }
  0x73   :  { %203 = vmatmul.f32.gmra.mxu0 %v39_v10  ;;  %515 = vperm.xlu0 %817, %v457_v11  }
  0x74   :  { %525 = vperm.xlu2 %819, %v459_v12   ;;  %v145_v40 = vpop.permute.xlu1 %144 }
  0x75   :  { %v155_v39 = vpop.permute.xlu0 %154  ;;  %v100_v9 = vpop.permute.xlu2 %99 }
  0x7a   :  { %535 = vperm.xlu1 %818, %v461_v13  }
  0x7b   :  { %206 = vmatmul.f32.gmra.mxu0 %v40_v14  ;;  %530 = vperm.xlu0 %817, %v460_v15  }
  0x7c   :  { %540 = vperm.xlu2 %819, %v462_v16   ;;  %v140_v49 = vpop.permute.xlu1 %139 }
  0x7d   :  { %v150_v43 = vpop.permute.xlu0 %149 }
  0x82   :  { %647 = vperm.xlu1 %818, %v625_v17  }
  0x83   :  { %642 = vperm.xlu0 %817, %v624_v18  }
  0x84   :  { %652 = vperm.xlu2 %819, %v626_v19   ;;  %v120_v63 = vpop.permute.xlu1 %119 }
  0x85   :  { %v125_v61 = vpop.permute.xlu0 %124 }
  0x8a   :  { %662 = vperm.xlu1 %818, %v628_v20  }
  0x8b   :  { %657 = vperm.xlu0 %817, %v627_v21  }
  0x8c   :  { %682 = vperm.xlu2 %819, %v632_v22   ;;  %v105_v7 = vpop.permute.xlu1 %104  ;;  %v85_v22 = vpop.permute.xlu2 %84 }
  0x8d   :  { %v110_v1 = vpop.permute.xlu0 %109 }
  0x92   :  { %692 = vperm.xlu1 %818, %v634_v23  }
  0x93   :  { %687 = vperm.xlu0 %817, %v633_v24  }
  0x94   :  { %697 = vperm.xlu2 %819, %v635_v25   ;;  %v90_v19 = vpop.permute.xlu1 %89 }
  0x95   :  { %v95_v12 = vpop.permute.xlu0 %94 }
  0x9a   :  { %667 = vperm.xlu1 %818, %v629_v26  }
  0x9b   :  { %702 = vperm.xlu0 %817, %v636_v27  }
  0x9c   :  { %707 = vperm.xlu2 %819, %v637_v28  }
  0x9d   :  { %v80_v25 = vpop.permute.xlu0 %79 }
  0xa0   :  { %v1241_v30 = vpop.f32.mrf.mxu0 }
  0xa1   :  { %v175_v27 = vadd.f32 %v1241_v30, %v80_v25  ;;  %v238_v30 = vld [vmem:[%s1424_s3] sm:$0xff] }
  0xa2   :  { %712 = vperm.xlu1 %818, %v638_v29  }
  0xa3   :  { %672 = vperm.xlu0 %817, %v630_v31  }
  0xa4   :  { %677 = vperm.xlu2 %819, %v631_v32  }
  0xa8   :  { %v1249_v33 = vpop.f32.mrf.mxu0 }
  0xa9   :  { %v178_v24 = vadd.f32 %v1249_v33, %v85_v22  ;;  %v250_v33 = vld [vmem:[%s1424_s3 + $0x60] sm:$0xff] }
  0xab   :  { %717 = vperm.xlu0 %817, %v639_v34  }
  0xaf   :  { %v210_v35 = vpop.f32.mrf.mxu3 }
  0xb0   :  { %v1254_v36 = vpop.f32.mrf.mxu0  ;;  %v211_v50 = vadd.f32 %v210_v35, %v140_v49  ;;  %v239_v35 = vld [vmem:[%s1424_s3 + $0x8] sm:$0xff] }
  0xb1   :  { %v181_v21 = vadd.f32 %v1254_v36, %v90_v19  ;;  %v251_v36 = vld [vmem:[%s1424_s3 + $0x68] sm:$0xff] }
  0xb7   :  { %v213_v37 = vpop.f32.mrf.mxu3 }
  0xb8   :  { %v1256_v38 = vpop.f32.mrf.mxu0  ;;  %v214_v46 = vadd.f32 %v213_v37, %v145_v40  ;;  %v240_v37 = vld [vmem:[%s1424_s3 + $0x10] sm:$0xff]  ;;  %v253_v40 = vld [vmem:[%s1424_s3 + $0x78] sm:$0xff] }
  0xb9   :  { %v184_v18 = vadd.f32 %v1256_v38, %v95_v12  ;;  %v252_v38 = vld [vmem:[%s1424_s3 + $0x70] sm:$0xff] }
  0xbf   :  { %v216_v41 = vpop.f32.mrf.mxu3 }
  0xc0   :  { %v186_v42 = vpop.f32.mrf.mxu0  ;;  %v217_v44 = vadd.f32 %v216_v41, %v150_v43  ;;  %v242_v41 = vld [vmem:[%s1424_s3 + $0x20] sm:$0xff]  ;;  %v244_v43 = vld [vmem:[%s1424_s3 + $0x30] sm:$0xff] }
  0xc1   :  { %v187_v16 = vadd.f32 %v186_v42, %v100_v9  ;;  %v243_v42 = vld [vmem:[%s1424_s3 + $0x28] sm:$0xff] }
  0xc2   :  { %820 = vtanh.f32 %v217_v44  ;;  %v245_v44 = vld [vmem:[%s1424_s3 + $0x38] sm:$0xff] }
  0xc7   :  { %v219_v45 = vpop.f32.mrf.mxu3 }
  0xc8   :  { %v189_v47 = vpop.f32.mrf.mxu0  ;;  %v220_v48 = vadd.f32 %v219_v45, %v155_v39  ;;  %v821_v51 = vpop.eup %820  ;;  %v241_v39 = vld [vmem:[%s1424_s3 + $0x18] sm:$0xff]  ;;  %v246_v45 = vld [vmem:[%s1424_s3 + $0x40] sm:$0xff] }
  0xc9   :  { %v190_v14 = vadd.f32 %v189_v47, %v105_v7  ;;  %v248_v47 = vld [vmem:[%s1424_s3 + $0x50] sm:$0xff] }
  0xca   :  { %822 = vtanh.f32 %v220_v48  ;;  %v249_v48 = vld [vmem:[%s1424_s3 + $0x58] sm:$0xff] }
  0xcb   :  { %824 = vtanh.f32 %v214_v46  ;;  %v247_v46 = vld [vmem:[%s1424_s3 + $0x48] sm:$0xff] }
  0xcc   :  { %826 = vtanh.f32 %v211_v50 }
  0xd0   :  { %v823_v52 = vpop.eup %822  ;;  %v192_v53 = vpop.f32.mrf.mxu0 }
  0xd1   :  { %350 = vmatpush.msra.mxu1 %v823_v52  ;;  %784 = vmatpush.msrb.mxu3 %v823_v52  ;;  %v825_v54 = vpop.eup %824  ;;  %v193_v11 = vadd.f32 %v192_v53, %v110_v1 }
  0xd2   :  { %v827_v55 = vpop.eup %826 }
  0xd3   :  { %351 = vmatpush.msra.mxu1 %v821_v51  ;;  %785 = vmatpush.msrb.mxu3 %v821_v51 }
  0xd5   :  { %352 = vmatpush.msra.mxu1 %v825_v54  ;;  %786 = vmatpush.msrb.mxu3 %v825_v54 }
  0xd7   :  { %353 = vmatpush.msra.mxu1 %v827_v55  ;;  %787 = vmatpush.msrb.mxu3 %v827_v55  ;;  %v348_v55 = vpop.permute.xlu1 %347 }
  0xd8   :  { %v195_v56 = vpop.f32.mrf.mxu0 }
  0xd9   :  { %v196_v8 = vadd.f32 %v195_v56, %v115_v0 }
  0xdf   :  { %v333_v0 = vpop.permute.xlu1 %332 }
  0xe0   :  { %v198_v57 = vpop.f32.mrf.mxu0 }
  0xe1   :  { %v199_v6 = vadd.f32 %v198_v57, %v120_v63  ;;  %v343_v57 = vpop.permute.xlu2 %342 }
  0xe8   :  { %v201_v59 = vpop.f32.mrf.mxu0 }
  0xe9   :  { %v202_v5 = vadd.f32 %v201_v59, %v125_v61  ;;  %v338_v61 = vpop.permute.xlu0 %337 }
  0xf0   :  { %v204_v62 = vpop.f32.mrf.mxu0 }
  0xf1   :  { %v205_v3 = vadd.f32 %v204_v62, %v130_v60  ;;  %v323_v12 = vpop.permute.xlu0 %322 }
  0xf8   :  { %v207_v2 = vpop.f32.mrf.mxu0 }
  0xf9   :  { %v208_v4 = vadd.f32 %v207_v2, %v135_v58 }
  0xfb   :  { %828 = vtanh.f32 %v208_v4 }
  0xfc   :  { %830 = vtanh.f32 %v205_v3 }
  0xfd   :  { %832 = vtanh.f32 %v202_v5 }
  0xfe   :  { %834 = vtanh.f32 %v199_v6 }
  0xff   :  { %836 = vtanh.f32 %v196_v8 }
 0x100   :  { %838 = vtanh.f32 %v193_v11  ;;  %v328_v11 = vpop.permute.xlu2 %327 }
 0x101   :  { %v829_v10 = vpop.eup %828  ;;  %840 = vtanh.f32 %v190_v14 }
 0x102   :  { %354 = vmatpush.msra.mxu1 %v829_v10  ;;  %788 = vmatpush.msrb.mxu3 %v829_v10  ;;  %v831_v13 = vpop.eup %830  ;;  %842 = vtanh.f32 %v187_v16  ;;  %v308_v16 = vpop.permute.xlu0 %307 }
 0x103   :  { %v833_v15 = vpop.eup %832  ;;  %844 = vtanh.f32 %v184_v18 }
 0x104   :  { %355 = vmatpush.msra.mxu1 %v831_v13  ;;  %789 = vmatpush.msrb.mxu3 %v831_v13  ;;  %v835_v17 = vpop.eup %834  ;;  %846 = vtanh.f32 %v181_v21  ;;  %v318_v13 = vpop.permute.xlu1 %317 }
 0x105   :  { %v837_v20 = vpop.eup %836  ;;  %848 = vtanh.f32 %v178_v24 }
 0x106   :  { %356 = vmatpush.msra.mxu1 %v833_v15  ;;  %790 = vmatpush.msrb.mxu3 %v833_v15  ;;  %v839_v23 = vpop.eup %838  ;;  %850 = vtanh.f32 %v175_v27 }
 0x107   :  { %v841_v26 = vpop.eup %840 }
 0x108   :  { %357 = vmatpush.msra.mxu1 %v835_v17  ;;  %791 = vmatpush.msrb.mxu3 %v835_v17  ;;  %v843_v28 = vpop.eup %842  ;;  %v313_v15 = vpop.permute.xlu2 %312 }
 0x109   :  { %v845_v29 = vpop.eup %844 }
 0x10a   :  { %358 = vmatpush.msra.mxu1 %v837_v20  ;;  %792 = vmatpush.msrb.mxu3 %v837_v20  ;;  %v847_v31 = vpop.eup %846  ;;  %v293_v25 = vpop.permute.xlu0 %292 }
 0x10b   :  { %v849_v32 = vpop.eup %848 }
 0x10c   :  { %359 = vmatpush.msra.mxu1 %v839_v23  ;;  %793 = vmatpush.msrb.mxu3 %v839_v23  ;;  %v851_v34 = vpop.eup %850  ;;  %v303_v17 = vpop.permute.xlu1 %302 }
 0x10e   :  { %360 = vmatpush.msra.mxu1 %v841_v26  ;;  %794 = vmatpush.msrb.mxu3 %v841_v26 }
 0x110   :  { %361 = vmatpush.msra.mxu1 %v843_v28  ;;  %795 = vmatpush.msrb.mxu3 %v843_v28  ;;  %v298_v23 = vpop.permute.xlu2 %297 }
 0x112   :  { %362 = vmatpush.msra.mxu1 %v845_v29  ;;  %796 = vmatpush.msrb.mxu3 %v845_v29 }
 0x114   :  { %363 = vmatpush.msra.mxu1 %v847_v31  ;;  %797 = vmatpush.msrb.mxu3 %v847_v31  ;;  %v288_v28 = vpop.permute.xlu1 %287 }
 0x116   :  { %364 = vmatpush.msra.mxu1 %v849_v32  ;;  %798 = vmatpush.msrb.mxu3 %v849_v32 }
 0x118   :  { %365 = vmatpush.msra.mxu1 %v851_v34  ;;  %799 = vmatpush.msrb.mxu3 %v851_v34 }
 0x119   :  { %366 = vmatmul.f32.vlgmr.msra.gmra.mxu1 %v238_v30  ;;  %402 = vmatmul.f32.vlgmr.msrb.gmra.mxu3 %v250_v33 }
 0x121   :  { %369 = vmatmul.f32.gmra.mxu1 %v239_v35  ;;  %405 = vmatmul.f32.gmra.mxu3 %v251_v36  ;;  %v283_v35 = vpop.permute.xlu2 %282 }
 0x129   :  { %372 = vmatmul.f32.gmra.mxu1 %v240_v37  ;;  %408 = vmatmul.f32.gmra.mxu3 %v252_v38  ;;  %v278_v38 = vpop.permute.xlu0 %277 }
 0x131   :  { %375 = vmatmul.f32.gmra.mxu1 %v241_v39  ;;  %411 = vmatmul.f32.gmra.mxu3 %v253_v40 }
 0x139   :  { %378 = vmatmul.f32.gmra.mxu1 %v242_v41  ;;  %v273_v41 = vpop.permute.xlu1 %272 }
 0x141   :  { %381 = vmatmul.f32.gmra.mxu1 %v243_v42 }
 0x149   :  { %384 = vmatmul.f32.gmra.mxu1 %v244_v43 }
 0x151   :  { %387 = vmatmul.f32.gmra.mxu1 %v245_v44 }
 0x159   :  { %390 = vmatmul.f32.gmra.mxu1 %v246_v45 }
 0x161   :  { %393 = vmatmul.f32.gmra.mxu1 %v247_v46 }
 0x169   :  { %396 = vmatmul.f32.gmra.mxu1 %v248_v47 }
 0x171   :  { %399 = vmatmul.f32.gmra.mxu1 %v249_v48  ;;  %v431_v48 = vld [vmem:[%s1425_s5] sm:$0xff] }
 0x196   :  { %v1310_v49 = vpop.f32.mrf.mxu1 }
 0x197   :  { %v368_v43 = vadd.f32 %v1310_v49, %v273_v41  ;;  %v443_v49 = vld [vmem:[%s1425_s5 + $0x60] sm:$0xff] }
 0x19c   :  { %v403_v50 = vpop.f32.mrf.mxu3 }
 0x19d   :  { %v404_v1 = vadd.f32 %v403_v50, %v333_v0  ;;  %v442_v0 = vld [vmem:[%s1425_s5 + $0x58] sm:$0xff] }
 0x19e   :  { %v1312_v51 = vpop.f32.mrf.mxu1 }
 0x19f   :  { %v371_v40 = vadd.f32 %v1312_v51, %v278_v38  ;;  %v432_v51 = vld [vmem:[%s1425_s5 + $0x8] sm:$0xff] }
 0x1a4   :  { %v406_v52 = vpop.f32.mrf.mxu3 }
 0x1a5   :  { %v407_v63 = vadd.f32 %v406_v52, %v338_v61  ;;  %v444_v52 = vld [vmem:[%s1425_s5 + $0x68] sm:$0xff]  ;;  %v439_v61 = vld [vmem:[%s1425_s5 + $0x40] sm:$0xff] }
 0x1a6   :  { %v1314_v53 = vpop.f32.mrf.mxu1 }
 0x1a7   :  { %v374_v37 = vadd.f32 %v1314_v53, %v283_v35  ;;  %v433_v53 = vld [vmem:[%s1425_s5 + $0x10] sm:$0xff] }
 0x1ac   :  { %v409_v54 = vpop.f32.mrf.mxu3 }
 0x1ad   :  { %v410_v59 = vadd.f32 %v409_v54, %v343_v57  ;;  %v445_v54 = vld [vmem:[%s1425_s5 + $0x70] sm:$0xff]  ;;  %v435_v57 = vld [vmem:[%s1425_s5 + $0x20] sm:$0xff] }
 0x1ae   :  { %v1316_v56 = vpop.f32.mrf.mxu1 }
 0x1af   :  { %v377_v34 = vadd.f32 %v1316_v56, %v288_v28  ;;  %v446_v56 = vld [vmem:[%s1425_s5 + $0x78] sm:$0xff] }
 0x1b4   :  { %v412_v58 = vpop.f32.mrf.mxu3 }
 0x1b5   :  { %v413_v60 = vadd.f32 %v412_v58, %v348_v55  ;;  %v434_v55 = vld [vmem:[%s1425_s5 + $0x18] sm:$0xff]  ;;  %v436_v58 = vld [vmem:[%s1425_s5 + $0x28] sm:$0xff] }
 0x1b6   :  { %v379_v62 = vpop.f32.mrf.mxu1 }
 0x1b7   :  { %852 = vtanh.f32 %v413_v60  ;;  %v380_v30 = vadd.f32 %v379_v62, %v293_v25  ;;  %v438_v60 = vld [vmem:[%s1425_s5 + $0x38] sm:$0xff]  ;;  %v440_v62 = vld [vmem:[%s1425_s5 + $0x48] sm:$0xff] }
 0x1b8   :  { %854 = vtanh.f32 %v410_v59  ;;  %v437_v59 = vld [vmem:[%s1425_s5 + $0x30] sm:$0xff] }
 0x1b9   :  { %856 = vtanh.f32 %v407_v63  ;;  %v441_v63 = vld [vmem:[%s1425_s5 + $0x50] sm:$0xff] }
 0x1ba   :  { %858 = vtanh.f32 %v404_v1  ;;  %v466_v1 = vpop.permute.xlu2 %465 }
 0x1bd   :  { %v853_v2 = vpop.eup %852 }
 0x1be   :  { %v382_v3 = vpop.f32.mrf.mxu1  ;;  %543 = vmatpush.msra.mxu2 %v853_v2  ;;  %800 = vmatpush.msra.mxu3 %v853_v2  ;;  %v855_v4 = vpop.eup %854 }
 0x1bf   :  { %v857_v5 = vpop.eup %856  ;;  %v383_v31 = vadd.f32 %v382_v3, %v298_v23  ;;  %v471_v2 = vpop.permute.xlu0 %470 }
 0x1c0   :  { %544 = vmatpush.msra.mxu2 %v855_v4  ;;  %801 = vmatpush.msra.mxu3 %v855_v4  ;;  %v859_v6 = vpop.eup %858  ;;  %v476_v4 = vpop.permute.xlu1 %475 }
 0x1c2   :  { %545 = vmatpush.msra.mxu2 %v857_v5  ;;  %802 = vmatpush.msra.mxu3 %v857_v5  ;;  %v481_v3 = vpop.permute.xlu2 %480 }
 0x1c4   :  { %546 = vmatpush.msra.mxu2 %v859_v6  ;;  %803 = vmatpush.msra.mxu3 %v859_v6 }
 0x1c6   :  { %v385_v7 = vpop.f32.mrf.mxu1 }
 0x1c7   :  { %v386_v27 = vadd.f32 %v385_v7, %v303_v17  ;;  %v486_v5 = vpop.permute.xlu0 %485 }
 0x1c8   :  { %v491_v7 = vpop.permute.xlu1 %490 }
 0x1ca   :  { %v496_v6 = vpop.permute.xlu2 %495 }
 0x1ce   :  { %v388_v8 = vpop.f32.mrf.mxu1 }
 0x1cf   :  { %v389_v24 = vadd.f32 %v388_v8, %v308_v16  ;;  %v501_v8 = vpop.permute.xlu0 %500 }
 0x1d6   :  { %v391_v9 = vpop.f32.mrf.mxu1 }
 0x1d7   :  { %v392_v22 = vadd.f32 %v391_v9, %v313_v15  ;;  %v1370_v9 = vpop.permute.xlu2 %510 }
 0x1de   :  { %v394_v10 = vpop.f32.mrf.mxu1 }
 0x1df   :  { %v395_v21 = vadd.f32 %v394_v10, %v318_v13  ;;  %v1372_v10 = vpop.permute.xlu1 %505  ;;  %v1376_v13 = vpop.permute.xlu2 %525 }
 0x1e6   :  { %v397_v14 = vpop.f32.mrf.mxu1 }
 0x1e7   :  { %v398_v19 = vadd.f32 %v397_v14, %v323_v12  ;;  %v1374_v12 = vpop.permute.xlu0 %515  ;;  %v1378_v15 = vpop.permute.xlu1 %520 }
 0x1e8   :  { %v1382_v17 = vpop.permute.xlu2 %540 }
 0x1ee   :  { %v400_v18 = vpop.f32.mrf.mxu1 }
 0x1ef   :  { %v401_v20 = vadd.f32 %v400_v18, %v328_v11  ;;  %v1380_v16 = vpop.permute.xlu0 %530 }
 0x1f1   :  { %860 = vtanh.f32 %v401_v20 }
 0x1f2   :  { %862 = vtanh.f32 %v398_v19  ;;  %v1384_v19 = vpop.permute.xlu1 %535 }
 0x1f3   :  { %864 = vtanh.f32 %v395_v21 }
 0x1f4   :  { %866 = vtanh.f32 %v392_v22  ;;  %v653_v22 = vpop.permute.xlu2 %652 }
 0x1f5   :  { %868 = vtanh.f32 %v389_v24 }
 0x1f6   :  { %870 = vtanh.f32 %v386_v27 }
 0x1f7   :  { %v861_v26 = vpop.eup %860  ;;  %872 = vtanh.f32 %v383_v31  ;;  %v643_v20 = vpop.permute.xlu0 %642 }
 0x1f8   :  { %547 = vmatpush.msra.mxu2 %v861_v26  ;;  %804 = vmatpush.msra.mxu3 %v861_v26  ;;  %v863_v29 = vpop.eup %862  ;;  %874 = vtanh.f32 %v380_v30 }
 0x1f9   :  { %v865_v32 = vpop.eup %864  ;;  %876 = vtanh.f32 %v377_v34 }
 0x1fa   :  { %548 = vmatpush.msra.mxu2 %v863_v29  ;;  %805 = vmatpush.msra.mxu3 %v863_v29  ;;  %v867_v33 = vpop.eup %866  ;;  %878 = vtanh.f32 %v374_v37  ;;  %v648_v23 = vpop.permute.xlu1 %647 }
 0x1fb   :  { %v869_v36 = vpop.eup %868  ;;  %880 = vtanh.f32 %v371_v40 }
 0x1fc   :  { %549 = vmatpush.msra.mxu2 %v865_v32  ;;  %806 = vmatpush.msra.mxu3 %v865_v32  ;;  %v871_v39 = vpop.eup %870  ;;  %882 = vtanh.f32 %v368_v43  ;;  %v1386_v26 = vpop.permute.xlu2 %682 }
 0x1fd   :  { %v873_v42 = vpop.eup %872 }
 0x1fe   :  { %550 = vmatpush.msra.mxu2 %v867_v33  ;;  %807 = vmatpush.msra.mxu3 %v867_v33  ;;  %v875_v44 = vpop.eup %874 }
 0x1ff   :  { %v877_v45 = vpop.eup %876  ;;  %v658_v24 = vpop.permute.xlu0 %657 }
 0x200   :  { %551 = vmatpush.msra.mxu2 %v869_v36  ;;  %808 = vmatpush.msra.mxu3 %v869_v36  ;;  %v879_v46 = vpop.eup %878 }
 0x201   :  { %v881_v47 = vpop.eup %880 }
 0x202   :  { %552 = vmatpush.msra.mxu2 %v871_v39  ;;  %809 = vmatpush.msra.mxu3 %v871_v39  ;;  %v883_v50 = vpop.eup %882  ;;  %v663_v27 = vpop.permute.xlu1 %662 }
 0x204   :  { %553 = vmatpush.msra.mxu2 %v873_v42  ;;  %810 = vmatpush.msra.mxu3 %v873_v42  ;;  %v1390_v34 = vpop.permute.xlu2 %697 }
 0x206   :  { %554 = vmatpush.msra.mxu2 %v875_v44  ;;  %811 = vmatpush.msra.mxu3 %v875_v44 }
 0x207   :  { %v1388_v32 = vpop.permute.xlu0 %687 }
 0x208   :  { %555 = vmatpush.msra.mxu2 %v877_v45  ;;  %812 = vmatpush.msra.mxu3 %v877_v45 }
 0x20a   :  { %556 = vmatpush.msra.mxu2 %v879_v46  ;;  %813 = vmatpush.msra.mxu3 %v879_v46  ;;  %v1392_v39 = vpop.permute.xlu1 %692 }
 0x20c   :  { %557 = vmatpush.msra.mxu2 %v881_v47  ;;  %814 = vmatpush.msra.mxu3 %v881_v47 }
 0x20e   :  { %558 = vmatpush.msra.mxu2 %v883_v50  ;;  %815 = vmatpush.msra.mxu3 %v883_v50 }
 0x20f   :  { %559 = vmatmul.f32.vlgmr.msra.gmra.mxu2 %v431_v48  ;;  %595 = vmatmul.f32.vlgmr.msra.gmra.mxu3 %v443_v49  ;;  %v1394_v43 = vpop.permute.xlu0 %702  ;;  %v1396_v49 = vpop.permute.xlu2 %707 }
 0x217   :  { %562 = vmatmul.f32.gmra.mxu2 %v432_v51  ;;  %598 = vmatmul.f32.gmra.mxu3 %v444_v52 }
 0x21f   :  { %565 = vmatmul.f32.gmra.mxu2 %v433_v53  ;;  %601 = vmatmul.f32.gmra.mxu3 %v445_v54 }
 0x227   :  { %568 = vmatmul.f32.gmra.mxu2 %v434_v55  ;;  %604 = vmatmul.f32.gmra.mxu3 %v446_v56 }
 0x22f   :  { %571 = vmatmul.f32.gmra.mxu2 %v435_v57 }
 0x237   :  { %574 = vmatmul.f32.gmra.mxu2 %v436_v58  ;;  %v668_v58 = vpop.permute.xlu1 %667 }
 0x23f   :  { %577 = vmatmul.f32.gmra.mxu2 %v437_v59 }
 0x247   :  { %580 = vmatmul.f32.gmra.mxu2 %v438_v60 }
 0x24f   :  { %583 = vmatmul.f32.gmra.mxu2 %v439_v61 }
 0x257   :  { %586 = vmatmul.f32.gmra.mxu2 %v440_v62  ;;  %v673_v62 = vpop.permute.xlu0 %672 }
 0x25f   :  { %589 = vmatmul.f32.gmra.mxu2 %v441_v63 }
 0x267   :  { %592 = vmatmul.f32.gmra.mxu2 %v442_v0 }
 0x292   :  { %v560_v11 = vpop.f32.mrf.mxu2  ;;  %v596_v59 = vpop.f32.mrf.mxu3 }
 0x293   :  { %v561_v29 = vadd.f32 %v560_v11, %v466_v1 }
 0x29a   :  { %v563_v14 = vpop.f32.mrf.mxu2  ;;  %v599_v11 = vpop.f32.mrf.mxu3 }
 0x29b   :  { %v564_v28 = vadd.f32 %v563_v14, %v471_v2 }
 0x29d   :  { %884 = vtanh.f32 %v564_v28 }
 0x29e   :  { %886 = vtanh.f32 %v561_v29 }
 0x2a2   :  { %v566_v18 = vpop.f32.mrf.mxu2 }
 0x2a3   :  { %v567_v30 = vadd.f32 %v566_v18, %v476_v4  ;;  %v885_v38 = vpop.eup %884  ;;  %v678_v4 = vpop.permute.xlu2 %677 }
 0x2a4   :  { %v887_v41 = vpop.eup %886  ;;  %v721_v44 = vmul.f32 %v885_v38, %v648_v23 }
 0x2a5   :  { %888 = vtanh.f32 %v567_v30  ;;  %v720_v46 = vmul.f32 %v887_v41, %v643_v20 }
 0x2a7   :  { %v736_v50 = vadd.f32 %v721_v44, %v720_v46 }
 0x2aa   :  { %v569_v21 = vpop.f32.mrf.mxu2 }
 0x2ab   :  { %v570_v33 = vadd.f32 %v569_v21, %v481_v3  ;;  %v889_v42 = vpop.eup %888 }
 0x2ac   :  { %v722_v47 = vmul.f32 %v889_v42, %v653_v22 }
 0x2ad   :  { %890 = vtanh.f32 %v570_v33 }
 0x2ae   :  { %v737_v55 = vadd.f32 %v736_v50, %v722_v47  ;;  %v713_v50 = vpop.permute.xlu1 %712 }
 0x2b2   :  { %v572_v25 = vpop.f32.mrf.mxu2 }
 0x2b3   :  { %v573_v35 = vadd.f32 %v572_v25, %v486_v5  ;;  %v891_v45 = vpop.eup %890  ;;  %v602_v25 = vpop.f32.mrf.mxu3 }
 0x2b4   :  { %v723_v51 = vmul.f32 %v891_v45, %v658_v24  ;;  %v603_v42 = vadd.f32 %v602_v25, %v1384_v19 }
 0x2b5   :  { %892 = vtanh.f32 %v573_v35 }
 0x2b6   :  { %v738_v60 = vadd.f32 %v737_v55, %v723_v51 }
 0x2ba   :  { %v575_v31 = vpop.f32.mrf.mxu2 }
 0x2bb   :  { %v576_v36 = vadd.f32 %v575_v31, %v491_v7  ;;  %v893_v48 = vpop.eup %892 }
 0x2bc   :  { %v724_v56 = vmul.f32 %v893_v48, %v663_v27 }
 0x2bd   :  { %894 = vtanh.f32 %v576_v36 }
 0x2be   :  { %v739_v63 = vadd.f32 %v738_v60, %v724_v56 }
 0x2c2   :  { %v578_v37 = vpop.f32.mrf.mxu2 }
 0x2c3   :  { %v579_v40 = vadd.f32 %v578_v37, %v496_v6  ;;  %v895_v53 = vpop.eup %894  ;;  %v600_v37 = vadd.f32 %v599_v11, %v1380_v16 }
 0x2c4   :  { %v725_v61 = vmul.f32 %v895_v53, %v668_v58  ;;  %v718_v53 = vpop.permute.xlu0 %717 }
 0x2c5   :  { %896 = vtanh.f32 %v579_v40 }
 0x2c6   :  { %v740_v1 = vadd.f32 %v739_v63, %v725_v61 }
 0x2ca   :  { %v581_v52 = vpop.f32.mrf.mxu2 }
 0x2cb   :  { %v582_v54 = vadd.f32 %v581_v52, %v501_v8  ;;  %v897_v57 = vpop.eup %896 }
 0x2cc   :  { %v726_v0 = vmul.f32 %v897_v57, %v673_v62 }
 0x2cd   :  { %898 = vtanh.f32 %v582_v54 }
 0x2ce   :  { %v741_v5 = vadd.f32 %v740_v1, %v726_v0 }
 0x2d2   :  { %v584_v2 = vpop.f32.mrf.mxu2 }
 0x2d3   :  { %v899_v3 = vpop.eup %898  ;;  %v585_v22 = vadd.f32 %v584_v2, %v1372_v10 }
 0x2d4   :  { %v727_v6 = vmul.f32 %v899_v3, %v678_v4 }
 0x2d6   :  { %v742_v7 = vadd.f32 %v741_v5, %v727_v6 }
 0x2d8   :  { %v743_v8 = vrot.slane %v742_v7, 4 }
 0x2da   :  { %v744_v14 = vadd.f32 %v743_v8, %v742_v7  ;;  %v587_v18 = vpop.f32.mrf.mxu2 }
 0x2db   :  { %v588_v20 = vadd.f32 %v587_v18, %v1370_v9  ;;  %v597_v9 = vadd.f32 %v596_v59, %v1376_v13 }
 0x2dc   :  { %v745_v21 = vrot.slane %v744_v14, 2 }
 0x2dd   :  { %900 = vtanh.f32 %v588_v20 }
 0x2de   :  { %v746_v23 = vadd.f32 %v745_v21, %v744_v14  ;;  %902 = vtanh.f32 %v585_v22 }
 0x2e0   :  { %v747_v24 = vrot.slane %v746_v23, 1 }
 0x2e2   :  { %v748_v27 = vadd.f32 %v747_v24, %v746_v23  ;;  %v590_v28 = vpop.f32.mrf.mxu2 }
 0x2e3   :  { %v591_v29 = vadd.f32 %v590_v28, %v1374_v12  ;;  %v901_v31 = vpop.eup %900  ;;  %v605_v12 = vpop.f32.mrf.mxu3 }
 0x2e4   :  { %749 = vst [vmem:[%s1426_s8] sm:$0x1] %v748_v27  ;;  %v903_v30 = vpop.eup %902  ;;  %v729_v10 = vmul.f32 %v901_v31, %v1388_v32  ;;  %v606_v13 = vadd.f32 %v605_v12, %v1382_v17 }
 0x2e5   :  { %904 = vtanh.f32 %v591_v29  ;;  %v728_v33 = vmul.f32 %v903_v30, %v1386_v26 }
 0x2e6   :  { %906 = vtanh.f32 %v597_v9 }
 0x2e7   :  { %v750_v40 = vadd.f32 %v729_v10, %v728_v33 }
 0x2ea   :  { %v593_v35 = vpop.f32.mrf.mxu2 }
 0x2eb   :  { %v905_v36 = vpop.eup %904  ;;  %v594_v38 = vadd.f32 %v593_v35, %v1378_v15 }
 0x2ec   :  { %v730_v41 = vmul.f32 %v905_v36, %v1392_v39  ;;  %v907_v26 = vpop.eup %906 }
 0x2ed   :  { %908 = vtanh.f32 %v594_v38  ;;  %v732_v15 = vmul.f32 %v907_v26, %v1394_v43 }
 0x2ee   :  { %v751_v44 = vadd.f32 %v750_v40, %v730_v41  ;;  %910 = vtanh.f32 %v600_v37 }
 0x2ef   :  { %912 = vtanh.f32 %v603_v42 }
 0x2f0   :  { %914 = vtanh.f32 %v606_v13 }
 0x2f3   :  { %v909_v32 = vpop.eup %908 }
 0x2f4   :  { %v731_v16 = vmul.f32 %v909_v32, %v1390_v34  ;;  %v911_v45 = vpop.eup %910 }
 0x2f5   :  { %v913_v47 = vpop.eup %912  ;;  %v733_v39 = vmul.f32 %v911_v45, %v1396_v49 }
 0x2f6   :  { %v752_v46 = vadd.f32 %v751_v44, %v731_v16  ;;  %v915_v19 = vpop.eup %914  ;;  %v734_v51 = vmul.f32 %v913_v47, %v713_v50 }
 0x2f7   :  { %v735_v17 = vmul.f32 %v915_v19, %v718_v53 }
 0x2f8   :  { %v753_v48 = vadd.f32 %v752_v46, %v732_v15 }
 0x2fa   :  { %v754_v52 = vadd.f32 %v753_v48, %v733_v39 }
 0x2fc   :  { %v755_v54 = vadd.f32 %v754_v52, %v734_v51 }
 0x2fe   :  { %v756_v55 = vadd.f32 %v755_v54, %v735_v17 }
 0x300   :  { %v757_v56 = vrot.slane %v756_v55, 4 }
 0x302   :  { %v758_v57 = vadd.f32 %v757_v56, %v756_v55 }
 0x304   :  { %v759_v58 = vrot.slane %v758_v57, 2 }
 0x306   :  { %v760_v34 = vadd.f32 %v759_v58, %v758_v57 }
 0x308   :  { %v761_v59 = vrot.slane %v760_v34, 1 }
 0x30a   :  { %v762_v60 = vadd.f32 %v761_v59, %v760_v34 }
 0x30c   :  { %763 = vst [vmem:[%s1426_s8 + $0x1] sm:$0x1] %v762_v60 }

</bundles_post_ra>
